<compile_context>
chip_gen: v5e
topology: v5e:2x2
jax: 0.10.0
libtpu: 0.0.40
codegen_flags: <defaults>
</compile_context>

<pallas_src>
import jax
import jax.numpy as jnp
from jax import lax
from jax.experimental import pallas as pl
from jax.experimental.pallas import tpu as pltpu


def mlp_kernel(x_ref, w1_ref, b1_ref, w2_ref, b2_ref, o_ref):
    """Fused forward pass: logits = relu(x @ W1.T + b1) @ W2.T + b2.

    x_ref : (B, D)   float32   (flattened input, cast to bf16 in-kernel)
    w1_ref: (H, D)   bfloat16  (PyTorch layout, unpadded)
    b1_ref: (1, H)   float32
    w2_ref: (C, H)   bfloat16  (PyTorch layout, unpadded)
    b2_ref: (1, C)   float32
    o_ref : (B, C)   float32
    """
    # In-kernel cast: no separate XLA pad/cast dispatch, no extra HBM copy.
    x = x_ref[...].astype(jnp.bfloat16)

    # Hidden layer on the MXU: contract d_in of x with d_in of W1 (W1 kept in
    # (hidden, d_in) layout -> transposed-RHS matmul, f32 accumulation).
    h = lax.dot_general(
        x, w1_ref[...],
        dimension_numbers=(((1,), (1,)), ((), ())),
        preferred_element_type=jnp.float32)                      # (B, H)

    # Bias + ReLU in f32 on the VPU (v5e has no bf16 VPU path) — keep f32.
    h = jnp.maximum(h + b1_ref[...], 0.0)

    # Output layer on the MXU, same transposed-RHS contraction.
    logits = lax.dot_general(
        h.astype(jnp.bfloat16), w2_ref[...],
        dimension_numbers=(((1,), (1,)), ((), ())),
        preferred_element_type=jnp.float32)                      # (B, C)

    o_ref[...] = logits + b2_ref[...]


def prepare_params(w1, b1, w2, b2):
    """One-time parameter prep (outside the per-call forward path).

    Weights stay in PyTorch (out_features, in_features) layout — no transpose,
    no zero-padding — and are cast to bf16 (MXU-native).  Biases become
    (1, n) f32 rows for in-kernel broadcasting.
    """
    w1_bf = jnp.asarray(w1, jnp.float32).astype(jnp.bfloat16)    # (H, D)
    w2_bf = jnp.asarray(w2, jnp.float32).astype(jnp.bfloat16)    # (C, H)
    b1_r = jnp.asarray(b1, jnp.float32).reshape(1, -1)           # (1, H)
    b2_r = jnp.asarray(b2, jnp.float32).reshape(1, -1)           # (1, C)
    return w1_bf, b1_r, w2_bf, b2_r


@jax.jit
def neural_net_forward(x_nchw, w1_bf, b1_r, w2_bf, b2_r):
    """Matches Neural_Net.forward: Flatten -> Linear -> ReLU -> Linear.

    x_nchw : (B, C, H, W) float32 (PyTorch NCHW; Flatten is row-major)
    returns logits: (B, n_classes) float32
    """
    B = x_nchw.shape[0]
    x_flat = x_nchw.reshape(B, -1)                               # nn.Flatten
    d_in = x_flat.shape[1]
    hidden = w1_bf.shape[0]
    n_classes = w2_bf.shape[0]

    cost = pl.CostEstimate(
        flops=2 * B * (d_in * hidden + hidden * n_classes),
        transcendentals=0,
        bytes_accessed=(x_flat.size * 4 + w1_bf.size * 2 + w2_bf.size * 2
                        + b1_r.size * 4 + b2_r.size * 4 + B * n_classes * 4))

    return pl.pallas_call(
        mlp_kernel,
        out_shape=jax.ShapeDtypeStruct((B, n_classes), jnp.float32),
        # Gridless: single invocation, whole arrays as un-blocked VMEM refs.
        in_specs=[pl.BlockSpec(memory_space=pltpu.MemorySpace.VMEM)] * 5,
        out_specs=pl.BlockSpec(memory_space=pltpu.MemorySpace.VMEM),
        cost_estimate=cost,
        compiler_params=pltpu.CompilerParams(
            vmem_limit_bytes=16 * 1024 * 1024),
    )(x_flat, w1_bf, b1_r, w2_bf, b2_r)


def init_params(key, input_size, hidden_size, n_classes):
    """Deterministic init mimicking nn.Linear uniform(-1/sqrt(fan_in), 1/sqrt(fan_in))."""
    k1, k2, k3, k4 = jax.random.split(key, 4)
    bound1 = 1.0 / jnp.sqrt(jnp.float32(input_size))
    bound2 = 1.0 / jnp.sqrt(jnp.float32(hidden_size))
    w1 = jax.random.uniform(k1, (hidden_size, input_size), jnp.float32,
                            -bound1, bound1)
    b1 = jax.random.uniform(k2, (hidden_size,), jnp.float32, -bound1, bound1)
    w2 = jax.random.uniform(k3, (n_classes, hidden_size), jnp.float32,
                            -bound2, bound2)
    b2 = jax.random.uniform(k4, (n_classes,), jnp.float32, -bound2, bound2)
    return w1, b1, w2, b2


if __name__ == "__main__":
    # Small shapes consistent with the module:
    # Flatten(NCHW) -> Linear(1024, 32) -> ReLU -> Linear(32, 10)
    B, C, H, W = 2, 4, 16, 16
    input_size = C * H * W           # 1024
    hidden_size = 32
    n_classes = 10

    key = jax.random.PRNGKey(0)
    kx, kp = jax.random.split(key)
    x = jax.random.normal(kx, (B, C, H, W), jnp.float32)
    w1, b1, w2, b2 = init_params(kp, input_size, hidden_size, n_classes)

    # One-time parameter prep (bf16 cast; no transpose / padding), kept out of
    # the per-call forward path.
    w1_bf, b1_r, w2_bf, b2_r = prepare_params(w1, b1, w2, b2)

    logits = neural_net_forward(x, w1_bf, b1_r, w2_bf, b2_r)
    logits = jax.block_until_ready(logits)

    # Pure-JAX f32 reference of the same math.  Kernel matmuls use bf16
    # operands (f32 accumulation), so the tolerance is loosened accordingly.
    x_flat = x.reshape(B, -1)
    ref = jnp.maximum(x_flat @ w1.T + b1, 0.0) @ w2.T + b2
    assert logits.shape == (B, n_classes)
    assert jnp.allclose(logits, ref, atol=5e-2, rtol=5e-2), float(
        jnp.max(jnp.abs(logits - ref)))

    print("KERNEL_OK")
</pallas_src>

<mosaic_0001>
module attributes {stable_mosaic.version = 11 : i64} {
  func.func @mlp_kernel(%arg0: memref<2x1024xf32, #tpu.memory_space<vmem>>, %arg1: memref<32x1024xbf16, #tpu.memory_space<vmem>>, %arg2: memref<1x32xf32, #tpu.memory_space<vmem>>, %arg3: memref<10x32xbf16, #tpu.memory_space<vmem>>, %arg4: memref<1x10xf32, #tpu.memory_space<vmem>>, %arg5: memref<2x10xf32, #tpu.memory_space<vmem>>) attributes {dimension_semantics = [], scalar_prefetch = 0 : i64, scratch_operands = 0 : i64, tpu.core_type = #tpu.core_type<tc>} {
    %c0 = arith.constant 0 : index
    %c0_0 = arith.constant 0 : index
    %0 = vector.load %arg0[%c0, %c0_0] : memref<2x1024xf32, #tpu.memory_space<vmem>>, vector<2x1024xf32>
    %1 = arith.truncf %0 : vector<2x1024xf32> to vector<2x1024xbf16>
    %c0_1 = arith.constant 0 : index
    %c0_2 = arith.constant 0 : index
    %2 = vector.load %arg1[%c0_1, %c0_2] : memref<32x1024xbf16, #tpu.memory_space<vmem>>, vector<32x1024xbf16>
    %cst = arith.constant dense<0.000000e+00> : vector<2x32xf32>
    %3 = tpu.matmul %1, %2, %cst {dimension_numbers = #tpu.dot_dimension_numbers<[1], [1], [0], [0], [0, 0, 1, 0], [], []>} : vector<2x1024xbf16>, vector<32x1024xbf16>, vector<2x32xf32> -> vector<2x32xf32>
    %c0_3 = arith.constant 0 : index
    %c0_4 = arith.constant 0 : index
    %4 = vector.load %arg2[%c0_3, %c0_4] : memref<1x32xf32, #tpu.memory_space<vmem>>, vector<1x32xf32>
    %5 = vector.broadcast %4 : vector<1x32xf32> to vector<2x32xf32>
    %6 = arith.addf %3, %5 : vector<2x32xf32>
    %cst_5 = arith.constant 0.000000e+00 : f32
    %7 = vector.broadcast %cst_5 : f32 to vector<2x32xf32>
    %8 = arith.maximumf %6, %7 : vector<2x32xf32>
    %9 = arith.truncf %8 : vector<2x32xf32> to vector<2x32xbf16>
    %c0_6 = arith.constant 0 : index
    %c0_7 = arith.constant 0 : index
    %10 = vector.load %arg3[%c0_6, %c0_7] : memref<10x32xbf16, #tpu.memory_space<vmem>>, vector<10x32xbf16>
    %cst_8 = arith.constant dense<0.000000e+00> : vector<2x10xf32>
    %11 = tpu.matmul %9, %10, %cst_8 {dimension_numbers = #tpu.dot_dimension_numbers<[1], [1], [0], [0], [0, 0, 1, 0], [], []>} : vector<2x32xbf16>, vector<10x32xbf16>, vector<2x10xf32> -> vector<2x10xf32>
    %c0_9 = arith.constant 0 : index
    %c0_10 = arith.constant 0 : index
    %12 = vector.load %arg4[%c0_9, %c0_10] : memref<1x10xf32, #tpu.memory_space<vmem>>, vector<1x10xf32>
    %13 = vector.broadcast %12 : vector<1x10xf32> to vector<2x10xf32>
    %14 = arith.addf %11, %13 : vector<2x10xf32>
    %c0_11 = arith.constant 0 : index
    %c0_12 = arith.constant 0 : index
    %15 = vector.load %arg5[%c0_11, %c0_12] : memref<2x10xf32, #tpu.memory_space<vmem>>, vector<2x10xf32>
    tpu.vector_store %arg5[%c0_11, %c0_12], %14 {strides = array<i32>} : memref<2x10xf32, #tpu.memory_space<vmem>>, vector<2x10xf32>,
    return
  }
}

</mosaic_0001>

<bundles_post_ra>
// kernel: neural_net_forward.1
= control target key start
LH: loop header
LB: loop body
LE: loop exit
PB: predicated region body
PF: predicated region fallthrough
CT: control target
= control target key end

     0   :  { %s573_s0 = inlined_call_operand.vmem [shape: f32[2,1024], index: 0, kind: input, shape index: {}]   ;;  %s574_s1 = inlined_call_operand.vmem [shape: bf16[32,1024], index: 1, kind: input, shape index: {}]   ;;  %s575_s2 = inlined_call_operand.vmem [shape: f32[1,32], index: 2, kind: input, shape index: {}]   ;;  %s576_s3 = inlined_call_operand.vmem [shape: bf16[10,32], index: 3, kind: input, shape index: {}]   ;;  %s577_s4 = inlined_call_operand.vmem [shape: f32[1,10], index: 4, kind: input, shape index: {}]   ;;  %s578_s5 = inlined_call_operand.hbm [shape: f32[2,10], index: 5, kind: output, shape index: {}]  }
   0x1   :  { %v342_v0 = vld [vmem:[%s574_s1 + $0x40] sm:$0xf]  ;;  %v385_v2 = vld [vmem:[%s574_s1 + $0x44] sm:$0xf]  ;;  %v350_v5 = vld [vmem:[%s574_s1 + $0x48] sm:$0xf] }
   0x2   :  { %v389_v1 = vld [vmem:[%s574_s1 + $0x5c] sm:$0xf0]  ;;  %v344_v4 = vld [vmem:[%s574_s1 + $0x60] sm:$0xf0]  ;;  %v390_v6 = vld [vmem:[%s574_s1 + $0x64] sm:$0xf0] }
   0x3   :  { %v343_v3 = vor.u32 %v389_v1, %v342_v0  ;;  %v347_v7 = vor.u32 %v385_v2, %v344_v4  ;;  %v351_v8 = vor.u32 %v390_v6, %v350_v5  ;;  %v386_v9 = vld [vmem:[%s574_s1 + $0x4c] sm:$0xf]  ;;  %v310_v11 = vld [vmem:[%s574_s1] sm:$0xf]  ;;  %v377_v14 = vld [vmem:[%s574_s1 + $0x4] sm:$0xf] }
   0x4   :  { %v352_v10 = vld [vmem:[%s574_s1 + $0x68] sm:$0xf0]  ;;  %v381_v13 = vld [vmem:[%s574_s1 + $0x1c] sm:$0xf0]  ;;  %v312_v15 = vld [vmem:[%s574_s1 + $0x20] sm:$0xf0] }
   0x5   :  { %159 = vmatpush.bf16.xpose.msra.mxu0 %v343_v3  ;;  %v355_v12 = vor.u32 %v386_v9, %v352_v10  ;;  %172 = vmatpush.bf16.xpose.msra.mxu1 %v347_v7  ;;  %v318_v16 = vld [vmem:[%s574_s1 + $0x8] sm:$0xf]  ;;  %v378_v18 = vld [vmem:[%s574_s1 + $0xc] sm:$0xf]  ;;  %v22_v20 = vld [vmem:[%s573_s0] sm:$0xff]  ;;  %v311_v24 = vor.u32 %v381_v13, %v310_v11  ;;  %v315_v28 = vor.u32 %v377_v14, %v312_v15 }
   0x6   :  { %185 = vmatpush.bf16.xpose.msra.mxu2 %v351_v8  ;;  %v382_v17 = vld [vmem:[%s574_s1 + $0x24] sm:$0xf0]  ;;  %v320_v19 = vld [vmem:[%s574_s1 + $0x28] sm:$0xf0]  ;;  %v366_v21 = vld [vmem:[%s574_s1 + $0x58] sm:$0xf] }
   0x7   :  { %198 = vmatpush.bf16.xpose.msra.mxu3 %v355_v12  ;;  %26 = vst [vmem:[#allocation1] ss:$4 sm:$0xff] %v22_v20  ;;  %v392_v22 = vld [vmem:[%s574_s1 + $0x74] sm:$0xf0]  ;;  %v358_v23 = vld [vmem:[%s574_s1 + $0x50] sm:$0xf]  ;;  %v319_v29 = vor.u32 %v382_v17, %v318_v16  ;;  %v323_v32 = vor.u32 %v378_v18, %v320_v19 }
   0x8   :  { %v391_v25 = vld [vmem:[%s574_s1 + $0x6c] sm:$0xf0]  ;;  %v387_v26 = vld [vmem:[%s574_s1 + $0x54] sm:$0xf]  ;;  %v388_v30 = vld [vmem:[%s574_s1 + $0x5c] sm:$0xf]  ;;  %v367_v33 = vor.u32 %v392_v22, %v366_v21 }
   0x9   :  { %v360_v27 = vld [vmem:[%s574_s1 + $0x70] sm:$0xf0]  ;;  %v368_v31 = vld [vmem:[%s574_s1 + $0x78] sm:$0xf0]  ;;  %v359_v34 = vor.u32 %v391_v25, %v358_v23  ;;  %v23_v37 = vld [vmem:[%s573_s0 + $0x8] sm:$0xff] }
   0xa   :  { %v363_v35 = vor.u32 %v387_v26, %v360_v27  ;;  %v371_v36 = vor.u32 %v388_v30, %v368_v31  ;;  %v334_v38 = vld [vmem:[%s574_s1 + $0x18] sm:$0xf]  ;;  %28 = vst [vmem:[#allocation1 + $0x20] ss:$4 sm:$0xff] %v23_v37  ;;  %v326_v42 = vld [vmem:[%s574_s1 + $0x10] sm:$0xf] }
   0xb   :  { %v384_v39 = vld [vmem:[%s574_s1 + $0x34] sm:$0xf0]  ;;  %v383_v43 = vld [vmem:[%s574_s1 + $0x2c] sm:$0xf0]  ;;  %v379_v49 = vld [vmem:[%s574_s1 + $0x14] sm:$0xf] }
   0xc   :  { %v328_v50 = vld [vmem:[%s574_s1 + $0x30] sm:$0xf0] }
   0xd   :  { %160 = vmatpush.bf16.xpose.msra.mxu0 %v311_v24  ;;  %173 = vmatpush.bf16.xpose.msra.mxu1 %v315_v28 }
   0xe   :  { %186 = vmatpush.bf16.xpose.msra.mxu2 %v319_v29  ;;  %v29_v40 = vld.sshfl [vmem:[#allocation1] sm:$0xff pattern:$0x73625140]  ;;  %v30_v41 = vld.sshfl [vmem:[#allocation1 + $0x8] sm:$0xff pattern:$0x73625140] }
   0xf   :  { %199 = vmatpush.bf16.xpose.msra.mxu3 %v323_v32  ;;  %v45_v44 = vpack.c.bf16 %v29_v40, %v29_v40  ;;  %v31_v45 = vld.sshfl [vmem:[#allocation1 + $0x10] sm:$0xff pattern:$0x73625140]  ;;  %v32_v46 = vld.sshfl [vmem:[#allocation1 + $0x18] sm:$0xff pattern:$0x73625140]  ;;  %v46_v47 = vpack.c.bf16 %v30_v41, %v30_v41 }
  0x10   :  { %v47_v48 = vpack.c.bf16 %v31_v45, %v31_v45 }
  0x15   :  { %211 = vmatpush.bf16.xpose.msrb.mxu0 %v359_v34  ;;  %224 = vmatpush.bf16.xpose.msrb.mxu1 %v363_v35 }
  0x16   :  { %237 = vmatpush.bf16.xpose.msrb.mxu2 %v367_v33 }
  0x17   :  { %250 = vmatpush.bf16.xpose.msrb.mxu3 %v371_v36 }
  0x18   :  { %10 = vsyncpa [#allocation3], 0  ;;  %v48_v51 = vpack.c.bf16 %v32_v46, %v32_v46  ;;  %v380_v52 = vld [vmem:[%s574_s1 + $0x1c] sm:$0xf]  ;;  %v335_v54 = vor.u32 %v384_v39, %v334_v38  ;;  %161 = vmatmul.bf16.vlgmr.msra.gmra.mxu0 %v45_v44  ;;  %v327_v55 = vor.u32 %v383_v43, %v326_v42  ;;  %v331_v56 = vor.u32 %v379_v49, %v328_v50  ;;  %v374_v2 = vld [vmem:[%s576_s3] sm:$0xf] }
  0x19   :  { %v336_v53 = vld [vmem:[%s574_s1 + $0x38] sm:$0xf0]  ;;  %174 = vmatmul.bf16.vlgmr.msra.gmra.mxu1 %v46_v47  ;;  %187 = vmatmul.bf16.vlgmr.msra.gmra.mxu2 %v47_v48  ;;  %v33_v58 = vld.sshfl [vmem:[#allocation1 + $0x20] sm:$0xff pattern:$0x73625140]  ;;  %vm270_vm0 = vcmask 261120  }
  0x1a   :  { %v339_v57 = vor.u32 %v380_v52, %v336_v53  ;;  %200 = vmatmul.bf16.vlgmr.msra.gmra.mxu3 %v48_v51  ;;  %v34_v59 = vld.sshfl [vmem:[#allocation1 + $0x28] sm:$0xff pattern:$0x73625140]  ;;  %v35_v60 = vld.sshfl [vmem:[#allocation1 + $0x30] sm:$0xff pattern:$0x73625140]  ;;  %v49_v62 = vpack.c.bf16 %v33_v58, %v33_v58 }
  0x1b   :  { %v36_v61 = vld.sshfl [vmem:[#allocation1 + $0x38] sm:$0xff pattern:$0x73625140]  ;;  %v50_v63 = vpack.c.bf16 %v34_v59, %v34_v59  ;;  %v51_v0 = vpack.c.bf16 %v35_v60, %v35_v60  ;;  %v393_v3 = vld [vmem:[%s576_s3] sm:$0x10]  ;;  %s423_s15 = smov [#allocation2]  }
  0x1c   :  { %v52_v1 = vpack.c.bf16 %v36_v61, %v36_v61  ;;  %v375_v4 = vor.u32 %v393_v3, %v374_v2  ;;  %v395_v6 = vld [vmem:[%s575_s2] ss:$0 sm:$0xff]  ;;  %s297_s16 = sshll.u32 %s423_s15, 4  ;;  %s299_s19 = sshll.u32 %s578_s5, 4  ;;  %vm290_vm1 = vcmask 74752   ;;  %s298_s16 = int_to_ptr.vmem [resolvable:$true] %s297_s16  ;;  %s300_s19 = int_to_ptr.hbm [resolvable:$true] %s299_s19 }
  0x1d   :  { %212 = vmatpush.bf16.xpose.msrb.mxu0 %v327_v55  ;;  %225 = vmatpush.bf16.xpose.msrb.mxu1 %v331_v56  ;;  %v396_v33 = vld [vmem:[%s577_s4] ss:$0 sm:$0xff] }
  0x1e   :  { %238 = vmatpush.bf16.xpose.msrb.mxu2 %v335_v54  ;;  %v275_v5 = vsel %vm270_vm0, %v375_v4, 0 }
  0x1f   :  { %251 = vmatpush.bf16.xpose.msrb.mxu3 %v339_v57 }
  0x25   :  { %284 = vmatpush.bf16.xpose.msra.mxu0 %v275_v5 }
  0x28   :  { %213 = vmatmul.bf16.vlgmr.msrb.gmra.mxu0 %v49_v62 }
  0x29   :  { %226 = vmatmul.bf16.vlgmr.msrb.gmra.mxu1 %v50_v63  ;;  %239 = vmatmul.bf16.vlgmr.msrb.gmra.mxu2 %v51_v0 }
  0x2a   :  { %252 = vmatmul.bf16.vlgmr.msrb.gmra.mxu3 %v52_v1 }
  0x95   :  { %v162_v7 = vpop.f32.mrf.mxu0 }
  0x96   :  { %v175_v8 = vpop.f32.mrf.mxu1  ;;  %v163_v9 = vadd.f32 %v395_v6, %v162_v7 }
  0x98   :  { %v176_v11 = vadd.f32 %v175_v8, %v163_v9 }
  0x9c   :  { %v188_v10 = vpop.f32.mrf.mxu2 }
  0x9d   :  { %v201_v12 = vpop.f32.mrf.mxu3  ;;  %v164_v13 = vpop.f32.mrf.mxu0  ;;  %v189_v15 = vadd.f32 %v188_v10, %v176_v11 }
  0x9e   :  { %v177_v14 = vpop.f32.mrf.mxu1 }
  0x9f   :  { %v202_v17 = vadd.f32 %v201_v12, %v189_v15 }
  0xa4   :  { %v190_v16 = vpop.f32.mrf.mxu2 }
  0xa5   :  { %v203_v18 = vpop.f32.mrf.mxu3  ;;  %v214_v19 = vpop.f32.mrf.mxu0 }
  0xa6   :  { %v227_v20 = vpop.f32.mrf.mxu1  ;;  %v215_v21 = vadd.f32 %v214_v19, %v202_v17 }
  0xa8   :  { %v228_v22 = vadd.f32 %v227_v20, %v215_v21 }
  0xac   :  { %v240_v23 = vpop.f32.mrf.mxu2 }
  0xad   :  { %v241_v24 = vadd.f32 %v240_v23, %v228_v22  ;;  %v253_v25 = vpop.f32.mrf.mxu3  ;;  %v216_v26 = vpop.f32.mrf.mxu0 }
  0xae   :  { %v229_v27 = vpop.f32.mrf.mxu1 }
  0xaf   :  { %v254_v28 = vadd.f32 %v253_v25, %v241_v24 }
  0xb1   :  { %v257_v29 = vmax.f32 %v254_v28, 0.0 }
  0xb3   :  { %v258_v30 = vpack.c.bf16 %v257_v29, %v257_v29 }
  0xb4   :  { %v242_v31 = vpop.f32.mrf.mxu2 }
  0xb5   :  { %v255_v32 = vpop.f32.mrf.mxu3  ;;  %376 = vmatmul.msk.bf16.vlgmr.msra.gmra.mxu0 %vm270_vm0, %v258_v30 }
 0x132   :  { %v286_v34 = vpop.f32.mrf.mxu0 }
 0x133   :  { %v287_v35 = vadd.f32 %v396_v33, %v286_v34 }
 0x135   :  { %291 = vst.msk [vmem:[#allocation2] sm:$0x3] %vm290_vm1, %v287_v35 }
 0x136   :  { %302 = dma.vmem_to_hbm [thread:$0]  %s298_s16, 32, %s300_s19, [#allocation3]  }
 0x13a   :  { %v288_v36 = vpop.f32.mrf.mxu0 }
 0x13b   :  { %421 = dma.done.wait [#allocation3], 32  }
 0x13c   :  { %422 = vsyncadd [#allocation3], 4294967264 }
 0x13d   :  { %307 = vsyncpa [#allocation3], 1 }

</bundles_post_ra>
